<compile_context>
chip_gen: v5e
topology: v5e:2x2
jax: 0.10.0
libtpu: 0.0.40
codegen_flags: <defaults>
</compile_context>

<pallas_src>
import jax
import jax.numpy as jnp
from jax.experimental import pallas as pl
from jax.experimental.pallas import tpu as pltpu

BN_EPS = 1e-5
MXU_DTYPE = jnp.bfloat16      # MXU operand dtype; accumulation + BN math stay f32


# ----------------------------------------------------------------------------
# in-kernel helpers
# ----------------------------------------------------------------------------
def _conv3x3_banded(x_ld, wb_ref):
    """3x3 / pad-1 conv on a lane-dense (H, W*Ci) slab.

    wb_ref holds (3, W*Ci, W*Co) banded weight matrices (one per row offset dh);
    the dw taps and W-boundary zeros are already baked in.  The dh shifts are
    applied with tiny 0/1 shift matrices on the MXU (no concat / pad needed).
    Returns the raw conv output as (H, W*Co) float32.
    """
    H = x_ld.shape[0]
    r = jax.lax.broadcasted_iota(jnp.int32, (H, H), 0)
    c = jax.lax.broadcasted_iota(jnp.int32, (H, H), 1)
    sdn = jnp.where(c == r - 1, 1.0, 0.0).astype(x_ld.dtype)   # row h <- row h-1
    sup = jnp.where(c == r + 1, 1.0, 0.0).astype(x_ld.dtype)   # row h <- row h+1
    xd = jnp.dot(sdn, x_ld, preferred_element_type=jnp.float32).astype(x_ld.dtype)
    xu = jnp.dot(sup, x_ld, preferred_element_type=jnp.float32).astype(x_ld.dtype)
    acc = jnp.dot(xd, wb_ref[0], preferred_element_type=jnp.float32)
    acc = acc + jnp.dot(x_ld, wb_ref[1], preferred_element_type=jnp.float32)
    acc = acc + jnp.dot(xu, wb_ref[2], preferred_element_type=jnp.float32)
    return acc


def _store_stats(acc, s_ref):
    # single-pass BN statistics: per-lane sum and sum of squares (per grid tile);
    # reduced to per-channel values in the wrapper.
    s_ref[0:1, :] = jnp.sum(acc, axis=0, keepdims=True)
    s_ref[1:2, :] = jnp.sum(acc * acc, axis=0, keepdims=True)


# ----------------------------------------------------------------------------
# kernels (each invoked once per batch image via grid=(N,))
# ----------------------------------------------------------------------------
def _make_kernel_conv1(has_proj):
    """pass 1: conv1 (+ optional 1x1 projection), raw outputs + BN partials."""
    def kernel(*refs):
        if has_proj:
            x_ref, w1_ref, wp_ref, y1_ref, s1_ref, id_ref, sp_ref = refs
        else:
            x_ref, w1_ref, y1_ref, s1_ref = refs
        x = x_ref[...].astype(MXU_DTYPE)                      # (H, W*Cin) lane-dense
        acc1 = _conv3x3_banded(x, w1_ref)                     # (H, W*Cp) f32
        _store_stats(acc1, s1_ref)
        y1_ref[...] = acc1
        if has_proj:
            accp = jnp.dot(x, wp_ref[...], preferred_element_type=jnp.float32)
            _store_stats(accp, sp_ref)
            id_ref[...] = accp
    return kernel


def _kernel_bn1_conv2(y1_ref, sc_ref, bi_ref, w2_ref, y2_ref, s2_ref):
    """pass 2: bn1 + relu fused with conv2, raw output + bn2 partial stats."""
    a = jnp.maximum(y1_ref[...] * sc_ref[...] + bi_ref[...], 0.0)   # f32, lane-dense
    acc2 = _conv3x3_banded(a.astype(MXU_DTYPE), w2_ref)
    _store_stats(acc2, s2_ref)
    y2_ref[...] = acc2


def _make_kernel_finalize(has_proj):
    """pass 3: bn2 + identity (+ bn1/relu projection) + final relu (all lane-dense)."""
    if has_proj:
        def kernel(y2_ref, sc2_ref, bi2_ref, id_ref, scp_ref, bip_ref, out_ref):
            ident = jnp.maximum(id_ref[...] * scp_ref[...] + bip_ref[...], 0.0)
            out_ref[...] = jnp.maximum(
                y2_ref[...] * sc2_ref[...] + bi2_ref[...] + ident, 0.0)
    else:
        def kernel(y2_ref, sc2_ref, bi2_ref, x_ref, out_ref):
            out_ref[...] = jnp.maximum(
                y2_ref[...] * sc2_ref[...] + bi2_ref[...] + x_ref[...], 0.0)
    return kernel


# ----------------------------------------------------------------------------
# wrapper-side glue (runs inside the same jit -> fused by XLA)
# ----------------------------------------------------------------------------
def _banded_conv3x3_weights(w_hwio, W):
    """(3,3,Ci,Co) HWIO -> (3, W*Ci, W*Co): one banded matrix per row offset dh.

    Row block w', column block w carries w_hwio[dh, dw] iff w' == w + dw - 1;
    out-of-range taps are dropped, which implements the 1-pixel zero padding.
    """
    mats = []
    for dh in range(3):
        m = sum(jnp.kron(jnp.eye(W, k=1 - dw, dtype=w_hwio.dtype), w_hwio[dh, dw])
                for dw in range(3))
        mats.append(m)
    return jnp.stack(mats).astype(MXU_DTYPE)


def _block_diag_1x1_weights(w_1x1, W):
    """(Ci, Co) -> (W*Ci, W*Co) block diagonal: the 1x1 conv on the lane-dense layout."""
    return jnp.kron(jnp.eye(W, dtype=w_1x1.dtype), w_1x1).astype(MXU_DTYPE)


def _bn_scale_bias(stats, gamma, beta, W, count):
    """Reduce per-image lane-layout [sum, sum_sq] partials to per-channel scale/bias."""
    C = gamma.shape[0]
    s = jnp.sum(stats[:, 0, :].reshape(-1, W, C), axis=(0, 1))
    ss = jnp.sum(stats[:, 1, :].reshape(-1, W, C), axis=(0, 1))
    mean = s / count
    var = jnp.maximum(ss / count - mean * mean, 0.0)   # biased var (training-mode BN)
    inv = jax.lax.rsqrt(var + BN_EPS)
    scale = gamma * inv
    bias = beta - mean * scale
    return scale, bias


def _lane_tile(v, W):
    """Per-channel (C,) vector -> (1, W*C) row matching the (H, W*C) lane layout."""
    return jnp.tile(v, (W,)).reshape(1, W * v.shape[0]).astype(jnp.float32)


@jax.jit
def basic_block_forward(x_nchw, params):
    """x_nchw: (N, Cin, H, W) float32 --- same convention as the PyTorch module."""
    N, Cin, H, W = x_nchw.shape
    Cp = params["w1"].shape[-1]
    has_proj = Cin != Cp
    count = float(N * H * W)

    # NCHW -> lane-dense (N, H, W*Cin).  No spatial-padding pass over HBM.
    x_ld = jnp.transpose(x_nchw, (0, 2, 3, 1)).astype(jnp.float32).reshape(N, H, W * Cin)

    w1b = _banded_conv3x3_weights(params["w1"], W)            # (3, W*Cin, W*Cp) bf16
    w2b = _banded_conv3x3_weights(params["w2"], W)            # (3, W*Cp,  W*Cp) bf16

    cparams = pltpu.CompilerParams(
        dimension_semantics=("parallel",),                    # megacore / 2 TCs on v7x
        vmem_limit_bytes=32 * 1024 * 1024,                    # fits v5e/v6e/v7x budgets
    )

    img = lambda n: (n, 0, 0)          # per-image blocks (batch dim squeezed)
    rep2 = lambda n: (0, 0)            # broadcast 2-D operands
    rep3 = lambda n: (0, 0, 0)         # broadcast 3-D operands

    act_spec_in = pl.BlockSpec((None, H, W * Cin), img)
    act_spec = pl.BlockSpec((None, H, W * Cp), img)
    stat_spec = pl.BlockSpec((None, 2, W * Cp), img)
    vec_spec = pl.BlockSpec((1, W * Cp), rep2)

    act_shape = jax.ShapeDtypeStruct((N, H, W * Cp), jnp.float32)
    stat_shape = jax.ShapeDtypeStruct((N, 2, W * Cp), jnp.float32)

    # ---- pass 1: conv1 (+ 1x1 projection), raw outputs + BN partial stats ----
    in_specs1 = [act_spec_in, pl.BlockSpec((3, W * Cin, W * Cp), rep3)]
    args1 = [x_ld, w1b]
    out_shape1 = [act_shape, stat_shape]
    out_specs1 = [act_spec, stat_spec]
    if has_proj:
        in_specs1.append(pl.BlockSpec((W * Cin, W * Cp), rep2))
        args1.append(_block_diag_1x1_weights(params["w_ch"], W))
        out_shape1 += [act_shape, stat_shape]
        out_specs1 += [act_spec, stat_spec]

    res1 = pl.pallas_call(
        _make_kernel_conv1(has_proj),
        grid=(N,),
        out_shape=tuple(out_shape1),
        in_specs=in_specs1,
        out_specs=tuple(out_specs1),
        compiler_params=cparams,
    )(*args1)
    if has_proj:
        y1_raw, s1, id_raw, sp = res1
    else:
        y1_raw, s1 = res1

    scale1, bias1 = _bn_scale_bias(s1, params["gamma1"], params["beta1"], W, count)

    # ---- pass 2: bn1 + relu fused with conv2, raw output + bn2 partial stats ----
    y2_raw, s2 = pl.pallas_call(
        _kernel_bn1_conv2,
        grid=(N,),
        out_shape=(act_shape, stat_shape),
        in_specs=[act_spec, vec_spec, vec_spec,
                  pl.BlockSpec((3, W * Cp, W * Cp), rep3)],
        out_specs=(act_spec, stat_spec),
        compiler_params=cparams,
    )(y1_raw, _lane_tile(scale1, W), _lane_tile(bias1, W), w2b)

    scale2, bias2 = _bn_scale_bias(s2, params["gamma2"], params["beta2"], W, count)

    # ---- pass 3: bn2 + identity (+ bn1/relu'd projection) + final relu ----
    args3 = [y2_raw, _lane_tile(scale2, W), _lane_tile(bias2, W)]
    in_specs3 = [act_spec, vec_spec, vec_spec]
    if has_proj:
        scale_p, bias_p = _bn_scale_bias(sp, params["gamma1"], params["beta1"], W, count)
        args3 += [id_raw, _lane_tile(scale_p, W), _lane_tile(bias_p, W)]
        in_specs3 += [act_spec, vec_spec, vec_spec]
    else:
        args3.append(x_ld)                 # Cin == Cp on this path
        in_specs3.append(act_spec_in)

    out_ld = pl.pallas_call(
        _make_kernel_finalize(has_proj),
        grid=(N,),
        out_shape=act_shape,
        in_specs=in_specs3,
        out_specs=act_spec,
        compiler_params=cparams,
    )(*args3)

    # lane-dense (N, H, W*Cp) -> NCHW (free reshape + one transpose in XLA)
    return jnp.transpose(out_ld.reshape(N, H, W, Cp), (0, 3, 1, 2))


# ----------------------------------------------------------------------------
# parameters / reference / test
# ----------------------------------------------------------------------------
def init_params(key, inplanes, planes):
    k = jax.random.split(key, 6)
    return {
        # conv3x3 weights in HWIO (PyTorch OIHW (planes, inplanes, 3, 3) transposed)
        "w1": 0.1 * jax.random.normal(k[0], (3, 3, inplanes, planes), jnp.float32),
        "w2": 0.1 * jax.random.normal(k[1], (3, 3, planes, planes), jnp.float32),
        # conv1x1 projection weight (inplanes -> planes)
        "w_ch": 0.1 * jax.random.normal(k[2], (inplanes, planes), jnp.float32),
        # BatchNorm affine parameters (deterministic, non-trivial)
        "gamma1": 1.0 + 0.1 * jax.random.normal(k[3], (planes,), jnp.float32),
        "beta1": 0.1 * jax.random.normal(k[4], (planes,), jnp.float32),
        "gamma2": 1.0 + 0.1 * jax.random.normal(k[5], (planes,), jnp.float32),
        "beta2": jnp.zeros((planes,), jnp.float32),
    }


def reference_forward(x_nchw, params):
    """Pure-JAX reference of the PyTorch BasicBlock.forward (training-mode BN)."""
    x = jnp.transpose(x_nchw, (0, 2, 3, 1)).astype(jnp.float32)   # NHWC
    Cin = x.shape[-1]
    Cp = params["w1"].shape[-1]

    def conv3(v, w):
        return jax.lax.conv_general_dilated(
            v, w, window_strides=(1, 1), padding=((1, 1), (1, 1)),
            dimension_numbers=("NHWC", "HWIO", "NHWC"))

    def bn(v, gamma, beta):
        mean = jnp.mean(v, axis=(0, 1, 2))
        var = jnp.mean((v - mean) ** 2, axis=(0, 1, 2))
        return (v - mean) * jax.lax.rsqrt(var + BN_EPS) * gamma + beta

    if Cin != Cp:
        ident = jnp.einsum("nhwc,cd->nhwd", x, params["w_ch"])
        ident = jnp.maximum(bn(ident, params["gamma1"], params["beta1"]), 0.0)
    else:
        ident = x
    out = jnp.maximum(bn(conv3(x, params["w1"]), params["gamma1"], params["beta1"]), 0.0)
    out = bn(conv3(out, params["w2"]), params["gamma2"], params["beta2"])
    out = jnp.maximum(out + ident, 0.0)
    return jnp.transpose(out, (0, 3, 1, 2))


if __name__ == "__main__":
    key = jax.random.PRNGKey(0)
    kx, kp = jax.random.split(key)

    # BasicBlock(inplanes=4, planes=8, stride=1, downsample=None): projection path
    N, inplanes, planes, H, W = 2, 4, 8, 16, 16
    x = jax.random.normal(kx, (N, inplanes, H, W), jnp.float32)
    params = init_params(kp, inplanes, planes)

    y = basic_block_forward(x, params)
    jax.block_until_ready(y)
    assert y.shape == (N, planes, H, W), y.shape
    assert bool(jnp.all(jnp.isfinite(y)))
    y_ref = reference_forward(x, params)
    err = float(jnp.max(jnp.abs(y - y_ref)))
    assert bool(jnp.allclose(y, y_ref, rtol=0.1, atol=0.1)), f"proj path max err {err}"

    # BasicBlock(inplanes=8, planes=8): plain identity path (no projection)
    params_id = init_params(kp, planes, planes)
    x_id = jax.random.normal(kx, (N, planes, H, W), jnp.float32)
    y_id = basic_block_forward(x_id, params_id)
    jax.block_until_ready(y_id)
    assert y_id.shape == (N, planes, H, W), y_id.shape
    assert bool(jnp.all(jnp.isfinite(y_id)))
    y_id_ref = reference_forward(x_id, params_id)
    err_id = float(jnp.max(jnp.abs(y_id - y_id_ref)))
    assert bool(jnp.allclose(y_id, y_id_ref, rtol=0.1, atol=0.1)), \
        f"identity path max err {err_id}"

    print("KERNEL_OK")
</pallas_src>

<mosaic_0001>
module attributes {stable_mosaic.version = 11 : i64} {
  func.func @kernel(%arg0: i32, %arg1: memref<1x16x64xf32, #tpu.memory_space<vmem>>, %arg2: memref<3x64x128xbf16, #tpu.memory_space<vmem>>, %arg3: memref<64x128xbf16, #tpu.memory_space<vmem>>, %arg4: memref<1x16x128xf32, #tpu.memory_space<vmem>>, %arg5: memref<1x2x128xf32, #tpu.memory_space<vmem>>, %arg6: memref<1x16x128xf32, #tpu.memory_space<vmem>>, %arg7: memref<1x2x128xf32, #tpu.memory_space<vmem>>) attributes {dimension_semantics = [#tpu.dimension_semantics<parallel>], iteration_bounds = array<i64: 2>, scalar_prefetch = 0 : i64, scratch_operands = 0 : i64, tpu.core_type = #tpu.core_type<tc>, window_params = [{transform_indices = @transform_0, window_bounds = array<i64: 1, 16, 64>}, {pipeline_mode = #tpu.pipeline_mode<synchronous>, transform_indices = @transform_1, window_bounds = array<i64: 3, 64, 128>}, {pipeline_mode = #tpu.pipeline_mode<synchronous>, transform_indices = @transform_2, window_bounds = array<i64: 64, 128>}, {transform_indices = @transform_3, window_bounds = array<i64: 1, 16, 128>}, {transform_indices = @transform_4, window_bounds = array<i64: 1, 2, 128>}, {transform_indices = @transform_5, window_bounds = array<i64: 1, 16, 128>}, {transform_indices = @transform_6, window_bounds = array<i64: 1, 2, 128>}]} {
    %c0 = arith.constant 0 : index
    %c0_0 = arith.constant 0 : index
    %c0_1 = arith.constant 0 : index
    %0 = vector.load %arg1[%c0, %c0_0, %c0_1] : memref<1x16x64xf32, #tpu.memory_space<vmem>>, vector<1x16x64xf32>
    %1 = vector.shape_cast %0 : vector<1x16x64xf32> to vector<16x64xf32>
    %2 = arith.truncf %1 : vector<16x64xf32> to vector<16x64xbf16>
    %3 = tpu.iota {dimensions = array<i32: 0>} : vector<16x16xi32>
    %4 = tpu.iota {dimensions = array<i32: 1>} : vector<16x16xi32>
    %c1_i32 = arith.constant 1 : i32
    %5 = vector.broadcast %c1_i32 : i32 to vector<16x16xi32>
    %6 = arith.subi %3, %5 : vector<16x16xi32>
    %7 = arith.cmpi eq, %4, %6 : vector<16x16xi32>
    %cst = arith.constant 1.000000e+00 : f32
    %cst_2 = arith.constant 0.000000e+00 : f32
    %8 = vector.broadcast %cst : f32 to vector<16x16xf32>
    %9 = vector.broadcast %cst_2 : f32 to vector<16x16xf32>
    %10 = arith.select %7, %8, %9 : vector<16x16xi1>, vector<16x16xf32>
    %11 = arith.truncf %10 : vector<16x16xf32> to vector<16x16xbf16>
    %c1_i32_3 = arith.constant 1 : i32
    %12 = vector.broadcast %c1_i32_3 : i32 to vector<16x16xi32>
    %13 = arith.addi %3, %12 : vector<16x16xi32>
    %14 = arith.cmpi eq, %4, %13 : vector<16x16xi32>
    %cst_4 = arith.constant 1.000000e+00 : f32
    %cst_5 = arith.constant 0.000000e+00 : f32
    %15 = vector.broadcast %cst_4 : f32 to vector<16x16xf32>
    %16 = vector.broadcast %cst_5 : f32 to vector<16x16xf32>
    %17 = arith.select %14, %15, %16 : vector<16x16xi1>, vector<16x16xf32>
    %18 = arith.truncf %17 : vector<16x16xf32> to vector<16x16xbf16>
    %cst_6 = arith.constant dense<0.000000e+00> : vector<16x64xf32>
    %19 = tpu.matmul %11, %2, %cst_6 {dimension_numbers = #tpu.dot_dimension_numbers<[1], [0], [0], [1], [0, 0, 1, 1], [], []>} : vector<16x16xbf16>, vector<16x64xbf16>, vector<16x64xf32> -> vector<16x64xf32>
    %20 = arith.truncf %19 : vector<16x64xf32> to vector<16x64xbf16>
    %cst_7 = arith.constant dense<0.000000e+00> : vector<16x64xf32>
    %21 = tpu.matmul %18, %2, %cst_7 {dimension_numbers = #tpu.dot_dimension_numbers<[1], [0], [0], [1], [0, 0, 1, 1], [], []>} : vector<16x16xbf16>, vector<16x64xbf16>, vector<16x64xf32> -> vector<16x64xf32>
    %22 = arith.truncf %21 : vector<16x64xf32> to vector<16x64xbf16>
    %c0_8 = arith.constant 0 : index
    %c0_9 = arith.constant 0 : index
    %c0_10 = arith.constant 0 : index
    %23 = vector.load %arg2[%c0_8, %c0_9, %c0_10] : memref<3x64x128xbf16, #tpu.memory_space<vmem>>, vector<1x64x128xbf16>
    %24 = vector.shape_cast %23 : vector<1x64x128xbf16> to vector<64x128xbf16>
    %cst_11 = arith.constant dense<0.000000e+00> : vector<16x128xf32>
    %25 = tpu.matmul %20, %24, %cst_11 {dimension_numbers = #tpu.dot_dimension_numbers<[1], [0], [0], [1], [0, 0, 1, 1], [], []>} : vector<16x64xbf16>, vector<64x128xbf16>, vector<16x128xf32> -> vector<16x128xf32>
    %c1 = arith.constant 1 : index
    %c0_12 = arith.constant 0 : index
    %c0_13 = arith.constant 0 : index
    %26 = vector.load %arg2[%c1, %c0_12, %c0_13] : memref<3x64x128xbf16, #tpu.memory_space<vmem>>, vector<1x64x128xbf16>
    %27 = vector.shape_cast %26 : vector<1x64x128xbf16> to vector<64x128xbf16>
    %cst_14 = arith.constant dense<0.000000e+00> : vector<16x128xf32>
    %28 = tpu.matmul %2, %27, %cst_14 {dimension_numbers = #tpu.dot_dimension_numbers<[1], [0], [0], [1], [0, 0, 1, 1], [], []>} : vector<16x64xbf16>, vector<64x128xbf16>, vector<16x128xf32> -> vector<16x128xf32>
    %29 = arith.addf %25, %28 : vector<16x128xf32>
    %c2 = arith.constant 2 : index
    %c0_15 = arith.constant 0 : index
    %c0_16 = arith.constant 0 : index
    %30 = vector.load %arg2[%c2, %c0_15, %c0_16] : memref<3x64x128xbf16, #tpu.memory_space<vmem>>, vector<1x64x128xbf16>
    %31 = vector.shape_cast %30 : vector<1x64x128xbf16> to vector<64x128xbf16>
    %cst_17 = arith.constant dense<0.000000e+00> : vector<16x128xf32>
    %32 = tpu.matmul %22, %31, %cst_17 {dimension_numbers = #tpu.dot_dimension_numbers<[1], [0], [0], [1], [0, 0, 1, 1], [], []>} : vector<16x64xbf16>, vector<64x128xbf16>, vector<16x128xf32> -> vector<16x128xf32>
    %33 = arith.addf %29, %32 : vector<16x128xf32>
    %cst_18 = arith.constant dense<0.000000e+00> : vector<128xf32>
    %34 = vector.multi_reduction <add>, %33, %cst_18 [0] : vector<16x128xf32> to vector<128xf32>
    %35 = vector.shape_cast %34 : vector<128xf32> to vector<1x128xf32>
    %c0_19 = arith.constant 0 : index
    %c0_20 = arith.constant 0 : index
    %c0_21 = arith.constant 0 : index
    %36 = vector.load %arg5[%c0_19, %c0_20, %c0_21] : memref<1x2x128xf32, #tpu.memory_space<vmem>>, vector<1x1x128xf32>
    %37 = vector.shape_cast %36 : vector<1x1x128xf32> to vector<1x128xf32>
    %38 = vector.shape_cast %35 : vector<1x128xf32> to vector<1x1x128xf32>
    tpu.vector_store %arg5[%c0_19, %c0_20, %c0_21], %38 {strides = array<i32>} : memref<1x2x128xf32, #tpu.memory_space<vmem>>, vector<1x1x128xf32>,
    %39 = arith.mulf %33, %33 : vector<16x128xf32>
    %cst_22 = arith.constant dense<0.000000e+00> : vector<128xf32>
    %40 = vector.multi_reduction <add>, %39, %cst_22 [0] : vector<16x128xf32> to vector<128xf32>
    %41 = vector.shape_cast %40 : vector<128xf32> to vector<1x128xf32>
    %c0_23 = arith.constant 0 : index
    %c1_24 = arith.constant 1 : index
    %c0_25 = arith.constant 0 : index
    %42 = vector.load %arg5[%c0_23, %c1_24, %c0_25] : memref<1x2x128xf32, #tpu.memory_space<vmem>>, vector<1x1x128xf32>
    %43 = vector.shape_cast %42 : vector<1x1x128xf32> to vector<1x128xf32>
    %44 = vector.shape_cast %41 : vector<1x128xf32> to vector<1x1x128xf32>
    tpu.vector_store %arg5[%c0_23, %c1_24, %c0_25], %44 {strides = array<i32>} : memref<1x2x128xf32, #tpu.memory_space<vmem>>, vector<1x1x128xf32>,
    %c0_26 = arith.constant 0 : index
    %c0_27 = arith.constant 0 : index
    %c0_28 = arith.constant 0 : index
    %45 = vector.load %arg4[%c0_26, %c0_27, %c0_28] : memref<1x16x128xf32, #tpu.memory_space<vmem>>, vector<1x16x128xf32>
    %46 = vector.shape_cast %45 : vector<1x16x128xf32> to vector<16x128xf32>
    %47 = vector.shape_cast %33 : vector<16x128xf32> to vector<1x16x128xf32>
    tpu.vector_store %arg4[%c0_26, %c0_27, %c0_28], %47 {strides = array<i32>} : memref<1x16x128xf32, #tpu.memory_space<vmem>>, vector<1x16x128xf32>,
    %c0_29 = arith.constant 0 : index
    %c0_30 = arith.constant 0 : index
    %48 = vector.load %arg3[%c0_29, %c0_30] : memref<64x128xbf16, #tpu.memory_space<vmem>>, vector<64x128xbf16>
    %cst_31 = arith.constant dense<0.000000e+00> : vector<16x128xf32>
    %49 = tpu.matmul %2, %48, %cst_31 {dimension_numbers = #tpu.dot_dimension_numbers<[1], [0], [0], [1], [0, 0, 1, 1], [], []>} : vector<16x64xbf16>, vector<64x128xbf16>, vector<16x128xf32> -> vector<16x128xf32>
    %cst_32 = arith.constant dense<0.000000e+00> : vector<128xf32>
    %50 = vector.multi_reduction <add>, %49, %cst_32 [0] : vector<16x128xf32> to vector<128xf32>
    %51 = vector.shape_cast %50 : vector<128xf32> to vector<1x128xf32>
    %c0_33 = arith.constant 0 : index
    %c0_34 = arith.constant 0 : index
    %c0_35 = arith.constant 0 : index
    %52 = vector.load %arg7[%c0_33, %c0_34, %c0_35] : memref<1x2x128xf32, #tpu.memory_space<vmem>>, vector<1x1x128xf32>
    %53 = vector.shape_cast %52 : vector<1x1x128xf32> to vector<1x128xf32>
    %54 = vector.shape_cast %51 : vector<1x128xf32> to vector<1x1x128xf32>
    tpu.vector_store %arg7[%c0_33, %c0_34, %c0_35], %54 {strides = array<i32>} : memref<1x2x128xf32, #tpu.memory_space<vmem>>, vector<1x1x128xf32>,
    %55 = arith.mulf %49, %49 : vector<16x128xf32>
    %cst_36 = arith.constant dense<0.000000e+00> : vector<128xf32>
    %56 = vector.multi_reduction <add>, %55, %cst_36 [0] : vector<16x128xf32> to vector<128xf32>
    %57 = vector.shape_cast %56 : vector<128xf32> to vector<1x128xf32>
    %c0_37 = arith.constant 0 : index
    %c1_38 = arith.constant 1 : index
    %c0_39 = arith.constant 0 : index
    %58 = vector.load %arg7[%c0_37, %c1_38, %c0_39] : memref<1x2x128xf32, #tpu.memory_space<vmem>>, vector<1x1x128xf32>
    %59 = vector.shape_cast %58 : vector<1x1x128xf32> to vector<1x128xf32>
    %60 = vector.shape_cast %57 : vector<1x128xf32> to vector<1x1x128xf32>
    tpu.vector_store %arg7[%c0_37, %c1_38, %c0_39], %60 {strides = array<i32>} : memref<1x2x128xf32, #tpu.memory_space<vmem>>, vector<1x1x128xf32>,
    %c0_40 = arith.constant 0 : index
    %c0_41 = arith.constant 0 : index
    %c0_42 = arith.constant 0 : index
    %61 = vector.load %arg6[%c0_40, %c0_41, %c0_42] : memref<1x16x128xf32, #tpu.memory_space<vmem>>, vector<1x16x128xf32>
    %62 = vector.shape_cast %61 : vector<1x16x128xf32> to vector<16x128xf32>
    %63 = vector.shape_cast %49 : vector<16x128xf32> to vector<1x16x128xf32>
    tpu.vector_store %arg6[%c0_40, %c0_41, %c0_42], %63 {strides = array<i32>} : memref<1x16x128xf32, #tpu.memory_space<vmem>>, vector<1x16x128xf32>,
    return
  }
  func.func @transform_0(%arg0: i32) -> (i32, i32, i32) {
    %c0_i32 = arith.constant 0 : i32
    %c0_i32_0 = arith.constant 0 : i32
    %c0_i32_1 = arith.constant 0 : i32
    return %arg0, %c0_i32, %c0_i32_0 : i32, i32, i32
  }
  func.func @transform_1(%arg0: i32) -> (i32, i32, i32) {
    %c0_i32 = arith.constant 0 : i32
    %c0_i32_0 = arith.constant 0 : i32
    %c0_i32_1 = arith.constant 0 : i32
    %c0_i32_2 = arith.constant 0 : i32
    return %c0_i32, %c0_i32_0, %c0_i32_1 : i32, i32, i32
  }
  func.func @transform_2(%arg0: i32) -> (i32, i32) {
    %c0_i32 = arith.constant 0 : i32
    %c0_i32_0 = arith.constant 0 : i32
    %c0_i32_1 = arith.constant 0 : i32
    return %c0_i32, %c0_i32_0 : i32, i32
  }
  func.func @transform_3(%arg0: i32) -> (i32, i32, i32) {
    %c0_i32 = arith.constant 0 : i32
    %c0_i32_0 = arith.constant 0 : i32
    %c0_i32_1 = arith.constant 0 : i32
    return %arg0, %c0_i32, %c0_i32_0 : i32, i32, i32
  }
  func.func @transform_4(%arg0: i32) -> (i32, i32, i32) {
    %c0_i32 = arith.constant 0 : i32
    %c0_i32_0 = arith.constant 0 : i32
    %c0_i32_1 = arith.constant 0 : i32
    return %arg0, %c0_i32, %c0_i32_0 : i32, i32, i32
  }
  func.func @transform_5(%arg0: i32) -> (i32, i32, i32) {
    %c0_i32 = arith.constant 0 : i32
    %c0_i32_0 = arith.constant 0 : i32
    %c0_i32_1 = arith.constant 0 : i32
    return %arg0, %c0_i32, %c0_i32_0 : i32, i32, i32
  }
  func.func @transform_6(%arg0: i32) -> (i32, i32, i32) {
    %c0_i32 = arith.constant 0 : i32
    %c0_i32_0 = arith.constant 0 : i32
    %c0_i32_1 = arith.constant 0 : i32
    return %arg0, %c0_i32, %c0_i32_0 : i32, i32, i32
  }
}

module attributes {stable_mosaic.version = 11 : i64} {
  func.func @_kernel_bn1_conv2(%arg0: i32, %arg1: memref<1x16x128xf32, #tpu.memory_space<vmem>>, %arg2: memref<1x128xf32, #tpu.memory_space<vmem>>, %arg3: memref<1x128xf32, #tpu.memory_space<vmem>>, %arg4: memref<3x128x128xbf16, #tpu.memory_space<vmem>>, %arg5: memref<1x16x128xf32, #tpu.memory_space<vmem>>, %arg6: memref<1x2x128xf32, #tpu.memory_space<vmem>>) attributes {dimension_semantics = [#tpu.dimension_semantics<parallel>], iteration_bounds = array<i64: 2>, scalar_prefetch = 0 : i64, scratch_operands = 0 : i64, tpu.core_type = #tpu.core_type<tc>, window_params = [{transform_indices = @transform_0, window_bounds = array<i64: 1, 16, 128>}, {pipeline_mode = #tpu.pipeline_mode<synchronous>, transform_indices = @transform_1, window_bounds = array<i64: 1, 128>}, {pipeline_mode = #tpu.pipeline_mode<synchronous>, transform_indices = @transform_2, window_bounds = array<i64: 1, 128>}, {pipeline_mode = #tpu.pipeline_mode<synchronous>, transform_indices = @transform_3, window_bounds = array<i64: 3, 128, 128>}, {transform_indices = @transform_4, window_bounds = array<i64: 1, 16, 128>}, {transform_indices = @transform_5, window_bounds = array<i64: 1, 2, 128>}]} {
    %c0 = arith.constant 0 : index
    %c0_0 = arith.constant 0 : index
    %c0_1 = arith.constant 0 : index
    %0 = vector.load %arg1[%c0, %c0_0, %c0_1] : memref<1x16x128xf32, #tpu.memory_space<vmem>>, vector<1x16x128xf32>
    %1 = vector.shape_cast %0 : vector<1x16x128xf32> to vector<16x128xf32>
    %c0_2 = arith.constant 0 : index
    %c0_3 = arith.constant 0 : index
    %2 = vector.load %arg2[%c0_2, %c0_3] : memref<1x128xf32, #tpu.memory_space<vmem>>, vector<1x128xf32>
    %3 = vector.broadcast %2 : vector<1x128xf32> to vector<16x128xf32>
    %4 = arith.mulf %1, %3 : vector<16x128xf32>
    %c0_4 = arith.constant 0 : index
    %c0_5 = arith.constant 0 : index
    %5 = vector.load %arg3[%c0_4, %c0_5] : memref<1x128xf32, #tpu.memory_space<vmem>>, vector<1x128xf32>
    %6 = vector.broadcast %5 : vector<1x128xf32> to vector<16x128xf32>
    %7 = arith.addf %4, %6 : vector<16x128xf32>
    %cst = arith.constant 0.000000e+00 : f32
    %8 = vector.broadcast %cst : f32 to vector<16x128xf32>
    %9 = arith.maximumf %7, %8 : vector<16x128xf32>
    %10 = arith.truncf %9 : vector<16x128xf32> to vector<16x128xbf16>
    %11 = tpu.iota {dimensions = array<i32: 0>} : vector<16x16xi32>
    %12 = tpu.iota {dimensions = array<i32: 1>} : vector<16x16xi32>
    %c1_i32 = arith.constant 1 : i32
    %13 = vector.broadcast %c1_i32 : i32 to vector<16x16xi32>
    %14 = arith.subi %11, %13 : vector<16x16xi32>
    %15 = arith.cmpi eq, %12, %14 : vector<16x16xi32>
    %cst_6 = arith.constant 1.000000e+00 : f32
    %cst_7 = arith.constant 0.000000e+00 : f32
    %16 = vector.broadcast %cst_6 : f32 to vector<16x16xf32>
    %17 = vector.broadcast %cst_7 : f32 to vector<16x16xf32>
    %18 = arith.select %15, %16, %17 : vector<16x16xi1>, vector<16x16xf32>
    %19 = arith.truncf %18 : vector<16x16xf32> to vector<16x16xbf16>
    %c1_i32_8 = arith.constant 1 : i32
    %20 = vector.broadcast %c1_i32_8 : i32 to vector<16x16xi32>
    %21 = arith.addi %11, %20 : vector<16x16xi32>
    %22 = arith.cmpi eq, %12, %21 : vector<16x16xi32>
    %cst_9 = arith.constant 1.000000e+00 : f32
    %cst_10 = arith.constant 0.000000e+00 : f32
    %23 = vector.broadcast %cst_9 : f32 to vector<16x16xf32>
    %24 = vector.broadcast %cst_10 : f32 to vector<16x16xf32>
    %25 = arith.select %22, %23, %24 : vector<16x16xi1>, vector<16x16xf32>
    %26 = arith.truncf %25 : vector<16x16xf32> to vector<16x16xbf16>
    %cst_11 = arith.constant dense<0.000000e+00> : vector<16x128xf32>
    %27 = tpu.matmul %19, %10, %cst_11 {dimension_numbers = #tpu.dot_dimension_numbers<[1], [0], [0], [1], [0, 0, 1, 1], [], []>} : vector<16x16xbf16>, vector<16x128xbf16>, vector<16x128xf32> -> vector<16x128xf32>
    %28 = arith.truncf %27 : vector<16x128xf32> to vector<16x128xbf16>
    %cst_12 = arith.constant dense<0.000000e+00> : vector<16x128xf32>
    %29 = tpu.matmul %26, %10, %cst_12 {dimension_numbers = #tpu.dot_dimension_numbers<[1], [0], [0], [1], [0, 0, 1, 1], [], []>} : vector<16x16xbf16>, vector<16x128xbf16>, vector<16x128xf32> -> vector<16x128xf32>
    %30 = arith.truncf %29 : vector<16x128xf32> to vector<16x128xbf16>
    %c0_13 = arith.constant 0 : index
    %c0_14 = arith.constant 0 : index
    %c0_15 = arith.constant 0 : index
    %31 = vector.load %arg4[%c0_13, %c0_14, %c0_15] : memref<3x128x128xbf16, #tpu.memory_space<vmem>>, vector<1x128x128xbf16>
    %32 = vector.shape_cast %31 : vector<1x128x128xbf16> to vector<128x128xbf16>
    %cst_16 = arith.constant dense<0.000000e+00> : vector<16x128xf32>
    %33 = tpu.matmul %28, %32, %cst_16 {dimension_numbers = #tpu.dot_dimension_numbers<[1], [0], [0], [1], [0, 0, 1, 1], [], []>} : vector<16x128xbf16>, vector<128x128xbf16>, vector<16x128xf32> -> vector<16x128xf32>
    %c1 = arith.constant 1 : index
    %c0_17 = arith.constant 0 : index
    %c0_18 = arith.constant 0 : index
    %34 = vector.load %arg4[%c1, %c0_17, %c0_18] : memref<3x128x128xbf16, #tpu.memory_space<vmem>>, vector<1x128x128xbf16>
    %35 = vector.shape_cast %34 : vector<1x128x128xbf16> to vector<128x128xbf16>
    %cst_19 = arith.constant dense<0.000000e+00> : vector<16x128xf32>
    %36 = tpu.matmul %10, %35, %cst_19 {dimension_numbers = #tpu.dot_dimension_numbers<[1], [0], [0], [1], [0, 0, 1, 1], [], []>} : vector<16x128xbf16>, vector<128x128xbf16>, vector<16x128xf32> -> vector<16x128xf32>
    %37 = arith.addf %33, %36 : vector<16x128xf32>
    %c2 = arith.constant 2 : index
    %c0_20 = arith.constant 0 : index
    %c0_21 = arith.constant 0 : index
    %38 = vector.load %arg4[%c2, %c0_20, %c0_21] : memref<3x128x128xbf16, #tpu.memory_space<vmem>>, vector<1x128x128xbf16>
    %39 = vector.shape_cast %38 : vector<1x128x128xbf16> to vector<128x128xbf16>
    %cst_22 = arith.constant dense<0.000000e+00> : vector<16x128xf32>
    %40 = tpu.matmul %30, %39, %cst_22 {dimension_numbers = #tpu.dot_dimension_numbers<[1], [0], [0], [1], [0, 0, 1, 1], [], []>} : vector<16x128xbf16>, vector<128x128xbf16>, vector<16x128xf32> -> vector<16x128xf32>
    %41 = arith.addf %37, %40 : vector<16x128xf32>
    %cst_23 = arith.constant dense<0.000000e+00> : vector<128xf32>
    %42 = vector.multi_reduction <add>, %41, %cst_23 [0] : vector<16x128xf32> to vector<128xf32>
    %43 = vector.shape_cast %42 : vector<128xf32> to vector<1x128xf32>
    %c0_24 = arith.constant 0 : index
    %c0_25 = arith.constant 0 : index
    %c0_26 = arith.constant 0 : index
    %44 = vector.load %arg6[%c0_24, %c0_25, %c0_26] : memref<1x2x128xf32, #tpu.memory_space<vmem>>, vector<1x1x128xf32>
    %45 = vector.shape_cast %44 : vector<1x1x128xf32> to vector<1x128xf32>
    %46 = vector.shape_cast %43 : vector<1x128xf32> to vector<1x1x128xf32>
    tpu.vector_store %arg6[%c0_24, %c0_25, %c0_26], %46 {strides = array<i32>} : memref<1x2x128xf32, #tpu.memory_space<vmem>>, vector<1x1x128xf32>,
    %47 = arith.mulf %41, %41 : vector<16x128xf32>
    %cst_27 = arith.constant dense<0.000000e+00> : vector<128xf32>
    %48 = vector.multi_reduction <add>, %47, %cst_27 [0] : vector<16x128xf32> to vector<128xf32>
    %49 = vector.shape_cast %48 : vector<128xf32> to vector<1x128xf32>
    %c0_28 = arith.constant 0 : index
    %c1_29 = arith.constant 1 : index
    %c0_30 = arith.constant 0 : index
    %50 = vector.load %arg6[%c0_28, %c1_29, %c0_30] : memref<1x2x128xf32, #tpu.memory_space<vmem>>, vector<1x1x128xf32>
    %51 = vector.shape_cast %50 : vector<1x1x128xf32> to vector<1x128xf32>
    %52 = vector.shape_cast %49 : vector<1x128xf32> to vector<1x1x128xf32>
    tpu.vector_store %arg6[%c0_28, %c1_29, %c0_30], %52 {strides = array<i32>} : memref<1x2x128xf32, #tpu.memory_space<vmem>>, vector<1x1x128xf32>,
    %c0_31 = arith.constant 0 : index
    %c0_32 = arith.constant 0 : index
    %c0_33 = arith.constant 0 : index
    %53 = vector.load %arg5[%c0_31, %c0_32, %c0_33] : memref<1x16x128xf32, #tpu.memory_space<vmem>>, vector<1x16x128xf32>
    %54 = vector.shape_cast %53 : vector<1x16x128xf32> to vector<16x128xf32>
    %55 = vector.shape_cast %41 : vector<16x128xf32> to vector<1x16x128xf32>
    tpu.vector_store %arg5[%c0_31, %c0_32, %c0_33], %55 {strides = array<i32>} : memref<1x16x128xf32, #tpu.memory_space<vmem>>, vector<1x16x128xf32>,
    return
  }
  func.func @transform_0(%arg0: i32) -> (i32, i32, i32) {
    %c0_i32 = arith.constant 0 : i32
    %c0_i32_0 = arith.constant 0 : i32
    %c0_i32_1 = arith.constant 0 : i32
    return %arg0, %c0_i32, %c0_i32_0 : i32, i32, i32
  }
  func.func @transform_1(%arg0: i32) -> (i32, i32) {
    %c0_i32 = arith.constant 0 : i32
    %c0_i32_0 = arith.constant 0 : i32
    %c0_i32_1 = arith.constant 0 : i32
    return %c0_i32, %c0_i32_0 : i32, i32
  }
  func.func @transform_2(%arg0: i32) -> (i32, i32) {
    %c0_i32 = arith.constant 0 : i32
    %c0_i32_0 = arith.constant 0 : i32
    %c0_i32_1 = arith.constant 0 : i32
    return %c0_i32, %c0_i32_0 : i32, i32
  }
  func.func @transform_3(%arg0: i32) -> (i32, i32, i32) {
    %c0_i32 = arith.constant 0 : i32
    %c0_i32_0 = arith.constant 0 : i32
    %c0_i32_1 = arith.constant 0 : i32
    %c0_i32_2 = arith.constant 0 : i32
    return %c0_i32, %c0_i32_0, %c0_i32_1 : i32, i32, i32
  }
  func.func @transform_4(%arg0: i32) -> (i32, i32, i32) {
    %c0_i32 = arith.constant 0 : i32
    %c0_i32_0 = arith.constant 0 : i32
    %c0_i32_1 = arith.constant 0 : i32
    return %arg0, %c0_i32, %c0_i32_0 : i32, i32, i32
  }
  func.func @transform_5(%arg0: i32) -> (i32, i32, i32) {
    %c0_i32 = arith.constant 0 : i32
    %c0_i32_0 = arith.constant 0 : i32
    %c0_i32_1 = arith.constant 0 : i32
    return %arg0, %c0_i32, %c0_i32_0 : i32, i32, i32
  }
}

module attributes {stable_mosaic.version = 11 : i64} {
  func.func @kernel(%arg0: i32, %arg1: memref<1x16x128xf32, #tpu.memory_space<vmem>>, %arg2: memref<1x128xf32, #tpu.memory_space<vmem>>, %arg3: memref<1x128xf32, #tpu.memory_space<vmem>>, %arg4: memref<1x16x128xf32, #tpu.memory_space<vmem>>, %arg5: memref<1x128xf32, #tpu.memory_space<vmem>>, %arg6: memref<1x128xf32, #tpu.memory_space<vmem>>, %arg7: memref<1x16x128xf32, #tpu.memory_space<vmem>>) attributes {dimension_semantics = [#tpu.dimension_semantics<parallel>], iteration_bounds = array<i64: 2>, scalar_prefetch = 0 : i64, scratch_operands = 0 : i64, tpu.core_type = #tpu.core_type<tc>, window_params = [{transform_indices = @transform_0, window_bounds = array<i64: 1, 16, 128>}, {pipeline_mode = #tpu.pipeline_mode<synchronous>, transform_indices = @transform_1, window_bounds = array<i64: 1, 128>}, {pipeline_mode = #tpu.pipeline_mode<synchronous>, transform_indices = @transform_2, window_bounds = array<i64: 1, 128>}, {transform_indices = @transform_3, window_bounds = array<i64: 1, 16, 128>}, {pipeline_mode = #tpu.pipeline_mode<synchronous>, transform_indices = @transform_4, window_bounds = array<i64: 1, 128>}, {pipeline_mode = #tpu.pipeline_mode<synchronous>, transform_indices = @transform_5, window_bounds = array<i64: 1, 128>}, {transform_indices = @transform_6, window_bounds = array<i64: 1, 16, 128>}]} {
    %c0 = arith.constant 0 : index
    %c0_0 = arith.constant 0 : index
    %c0_1 = arith.constant 0 : index
    %0 = vector.load %arg4[%c0, %c0_0, %c0_1] : memref<1x16x128xf32, #tpu.memory_space<vmem>>, vector<1x16x128xf32>
    %1 = vector.shape_cast %0 : vector<1x16x128xf32> to vector<16x128xf32>
    %c0_2 = arith.constant 0 : index
    %c0_3 = arith.constant 0 : index
    %2 = vector.load %arg5[%c0_2, %c0_3] : memref<1x128xf32, #tpu.memory_space<vmem>>, vector<1x128xf32>
    %3 = vector.broadcast %2 : vector<1x128xf32> to vector<16x128xf32>
    %4 = arith.mulf %1, %3 : vector<16x128xf32>
    %c0_4 = arith.constant 0 : index
    %c0_5 = arith.constant 0 : index
    %5 = vector.load %arg6[%c0_4, %c0_5] : memref<1x128xf32, #tpu.memory_space<vmem>>, vector<1x128xf32>
    %6 = vector.broadcast %5 : vector<1x128xf32> to vector<16x128xf32>
    %7 = arith.addf %4, %6 : vector<16x128xf32>
    %cst = arith.constant 0.000000e+00 : f32
    %8 = vector.broadcast %cst : f32 to vector<16x128xf32>
    %9 = arith.maximumf %7, %8 : vector<16x128xf32>
    %c0_6 = arith.constant 0 : index
    %c0_7 = arith.constant 0 : index
    %c0_8 = arith.constant 0 : index
    %10 = vector.load %arg1[%c0_6, %c0_7, %c0_8] : memref<1x16x128xf32, #tpu.memory_space<vmem>>, vector<1x16x128xf32>
    %11 = vector.shape_cast %10 : vector<1x16x128xf32> to vector<16x128xf32>
    %c0_9 = arith.constant 0 : index
    %c0_10 = arith.constant 0 : index
    %12 = vector.load %arg2[%c0_9, %c0_10] : memref<1x128xf32, #tpu.memory_space<vmem>>, vector<1x128xf32>
    %13 = vector.broadcast %12 : vector<1x128xf32> to vector<16x128xf32>
    %14 = arith.mulf %11, %13 : vector<16x128xf32>
    %c0_11 = arith.constant 0 : index
    %c0_12 = arith.constant 0 : index
    %15 = vector.load %arg3[%c0_11, %c0_12] : memref<1x128xf32, #tpu.memory_space<vmem>>, vector<1x128xf32>
    %16 = vector.broadcast %15 : vector<1x128xf32> to vector<16x128xf32>
    %17 = arith.addf %14, %16 : vector<16x128xf32>
    %18 = arith.addf %17, %9 : vector<16x128xf32>
    %cst_13 = arith.constant 0.000000e+00 : f32
    %19 = vector.broadcast %cst_13 : f32 to vector<16x128xf32>
    %20 = arith.maximumf %18, %19 : vector<16x128xf32>
    %c0_14 = arith.constant 0 : index
    %c0_15 = arith.constant 0 : index
    %c0_16 = arith.constant 0 : index
    %21 = vector.load %arg7[%c0_14, %c0_15, %c0_16] : memref<1x16x128xf32, #tpu.memory_space<vmem>>, vector<1x16x128xf32>
    %22 = vector.shape_cast %21 : vector<1x16x128xf32> to vector<16x128xf32>
    %23 = vector.shape_cast %20 : vector<16x128xf32> to vector<1x16x128xf32>
    tpu.vector_store %arg7[%c0_14, %c0_15, %c0_16], %23 {strides = array<i32>} : memref<1x16x128xf32, #tpu.memory_space<vmem>>, vector<1x16x128xf32>,
    return
  }
  func.func @transform_0(%arg0: i32) -> (i32, i32, i32) {
    %c0_i32 = arith.constant 0 : i32
    %c0_i32_0 = arith.constant 0 : i32
    %c0_i32_1 = arith.constant 0 : i32
    return %arg0, %c0_i32, %c0_i32_0 : i32, i32, i32
  }
  func.func @transform_1(%arg0: i32) -> (i32, i32) {
    %c0_i32 = arith.constant 0 : i32
    %c0_i32_0 = arith.constant 0 : i32
    %c0_i32_1 = arith.constant 0 : i32
    return %c0_i32, %c0_i32_0 : i32, i32
  }
  func.func @transform_2(%arg0: i32) -> (i32, i32) {
    %c0_i32 = arith.constant 0 : i32
    %c0_i32_0 = arith.constant 0 : i32
    %c0_i32_1 = arith.constant 0 : i32
    return %c0_i32, %c0_i32_0 : i32, i32
  }
  func.func @transform_3(%arg0: i32) -> (i32, i32, i32) {
    %c0_i32 = arith.constant 0 : i32
    %c0_i32_0 = arith.constant 0 : i32
    %c0_i32_1 = arith.constant 0 : i32
    return %arg0, %c0_i32, %c0_i32_0 : i32, i32, i32
  }
  func.func @transform_4(%arg0: i32) -> (i32, i32) {
    %c0_i32 = arith.constant 0 : i32
    %c0_i32_0 = arith.constant 0 : i32
    %c0_i32_1 = arith.constant 0 : i32
    return %c0_i32, %c0_i32_0 : i32, i32
  }
  func.func @transform_5(%arg0: i32) -> (i32, i32) {
    %c0_i32 = arith.constant 0 : i32
    %c0_i32_0 = arith.constant 0 : i32
    %c0_i32_1 = arith.constant 0 : i32
    return %c0_i32, %c0_i32_0 : i32, i32
  }
  func.func @transform_6(%arg0: i32) -> (i32, i32, i32) {
    %c0_i32 = arith.constant 0 : i32
    %c0_i32_0 = arith.constant 0 : i32
    %c0_i32_1 = arith.constant 0 : i32
    return %arg0, %c0_i32, %c0_i32_0 : i32, i32, i32
  }
}

</mosaic_0001>

<bundles_post_ra>
// kernel: tile.33
= control target key start
LH: loop header
LB: loop body
LE: loop exit
PB: predicated region body
PF: predicated region fallthrough
CT: control target
= control target key end

     0   :  { %s28_s0 = inlined_call_operand.vmem [shape: f32[8], index: 0, kind: input, shape index: {}]   ;;  %s29_s1 = inlined_call_operand.vmem [shape: f32[16,8], index: 1, kind: output, shape index: {}]  }
   0x1   :  { %v4_v0 = vld [vmem:[%s28_s0] ss:$0 sm:$0xff] }
   0x2   :  { %5 = vst [vmem:[%s29_s1] sm:$0xff] %v4_v0 }
   0x3   :  { %8 = vst [vmem:[%s29_s1 + $0x8] sm:$0xff] %v4_v0 }

// kernel: tile.34
= control target key start
LH: loop header
LB: loop body
LE: loop exit
PB: predicated region body
PF: predicated region fallthrough
CT: control target
= control target key end

     0   :  { %s131_s10 = smov 120   ;;  %s132_s11 = smov 104   ;;  %vm3_vm0 = vcmask 64512   ;;  %vm9_vm1 = vcmask 1048512   ;;  %vm15_vm2 = vcmask 982912   ;;  %vm21_vm3 = vcmask 917312   ;;  %s207_s0 = inlined_call_operand.vmem [shape: f32[16,8], index: 0, kind: input, shape index: {}]   ;;  %s208_s1 = inlined_call_operand.vmem [shape: f32[1,128], index: 1, kind: output, shape index: {}]  }
   0x1   :  { %v101_v0 = vld [vmem:[%s207_s0 + $0xf] sm:$0x1]   ;;  %v103_v1 = vld [vmem:[%s207_s0 + $0xd] sm:$0x1]   ;;  %v105_v2 = vld [vmem:[%s207_s0 + $0xb] sm:$0x1]  }
   0x2   :  { %7 = vrot.lane.b32.xlu0 %v101_v0, %s131_s10  ;;  %19 = vrot.lane.b32.xlu1 %v103_v1, %s132_s11  ;;  %s133_s14 = smov 88   ;;  %v102_v3 = vld [vmem:[%s207_s0 + $0xe] sm:$0x1]   ;;  %v104_v4 = vld [vmem:[%s207_s0 + $0xc] sm:$0x1]   ;;  %s134_s19 = smov 112  }
   0x3   :  { %31 = vrot.lane.b32.xlu2 %v105_v2, %s133_s14  ;;  %s135_s20 = smov 96   ;;  %v106_v5 = vld [vmem:[%s207_s0 + $0xa] sm:$0x1]   ;;  %s136_s23 = smov 80   ;;  %v107_v6 = vld [vmem:[%s207_s0 + $0x9] sm:$0x1]  }
   0x4   :  { %v108_v7 = vld [vmem:[%s207_s0 + $0x8] sm:$0x1]   ;;  %s137_s28 = smov 72   ;;  %s138_s29 = smov 64   ;;  %v109_v8 = vld [vmem:[%s207_s0 + $0x7] sm:$0x1]  }
   0x5   :  { %s139_s3 = smov 56   ;;  %v110_v9 = vld [vmem:[%s207_s0 + $0x6] sm:$0x1]   ;;  %v111_v10 = vld [vmem:[%s207_s0 + $0x5] sm:$0x1]   ;;  %s140_s8 = smov 48  }
   0x6   :  { %s141_s9 = smov 40   ;;  %v112_v11 = vld [vmem:[%s207_s0 + $0x4] sm:$0x1]   ;;  %s142_s12 = smov 32   ;;  %v113_v12 = vld [vmem:[%s207_s0 + $0x3] sm:$0x1]  }
   0x7   :  { %v114_v13 = vld [vmem:[%s207_s0 + $0x2] sm:$0x1]   ;;  %s143_s17 = smov 24   ;;  %s144_s18 = smov 16   ;;  %v115_v14 = vld [vmem:[%s207_s0 + $0x1] sm:$0x1]  }
   0x8   :  { %s145_s21 = smov 8   ;;  %v2_v15 = vld [vmem:[%s207_s0] sm:$0x1]   ;;  %vm27_vm4 = vcmask 851712   ;;  %vm33_vm5 = vcmask 786112   ;;  %vm39_vm6 = vcmask 720512  }
   0x9   :  { %4 = vst.msk [vmem:[#allocation0] sm:$0x1] %vm3_vm0, %v2_v15   ;;  %vm45_vm7 = vcmask 654912   ;;  %vm51_vm8 = vcmask 589312   ;;  %vm57_vm9 = vcmask 523712   ;;  %vm63_vm10 = vcmask 458112  }
   0xa   :  { %13 = vrot.lane.b32.xlu0 %v102_v3, %s134_s19  ;;  %25 = vrot.lane.b32.xlu1 %v104_v4, %s135_s20  ;;  %vm69_vm11 = vcmask 392512   ;;  %vm75_vm12 = vcmask 326912   ;;  %vm81_vm13 = vcmask 261312   ;;  %vm87_vm14 = vcmask 195712  }
   0xb   :  { %37 = vrot.lane.b32.xlu2 %v106_v5, %s136_s23  ;;  %vm93_vm15 = vcmask 130112  }
  0x12   :  { %43 = vrot.lane.b32.xlu0 %v107_v6, %s137_s28  ;;  %49 = vrot.lane.b32.xlu1 %v108_v7, %s138_s29 }
  0x13   :  { %55 = vrot.lane.b32.xlu2 %v109_v8, %s139_s3 }
  0x1a   :  { %61 = vrot.lane.b32.xlu0 %v110_v9, %s140_s8  ;;  %67 = vrot.lane.b32.xlu1 %v111_v10, %s141_s9 }
  0x1b   :  { %73 = vrot.lane.b32.xlu2 %v112_v11, %s142_s12 }
  0x22   :  { %79 = vrot.lane.b32.xlu0 %v113_v12, %s143_s17  ;;  %85 = vrot.lane.b32.xlu1 %v114_v13, %s144_s18 }
  0x23   :  { %91 = vrot.lane.b32.xlu2 %v115_v14, %s145_s21 }
  0x5d   :  { %v32_v16 = vpop.permute.xlu2 %31  }
  0x65   :  { %v38_v17 = vpop.permute.xlu2 %37  }
  0x6d   :  { %v56_v18 = vpop.permute.xlu2 %55  }
  0x74   :  { %v8_v19 = vpop.permute.xlu0 %7   ;;  %v20_v20 = vpop.permute.xlu1 %19  }
  0x75   :  { %10 = vst.msk [vmem:[#allocation0] sm:$0x1] %vm9_vm1, %v8_v19   ;;  %v74_v21 = vpop.permute.xlu2 %73  }
  0x7c   :  { %v14_v22 = vpop.permute.xlu0 %13   ;;  %v26_v23 = vpop.permute.xlu1 %25  }
  0x7d   :  { %16 = vst.msk [vmem:[#allocation0] sm:$0x1] %vm15_vm2, %v14_v22   ;;  %v92_v24 = vpop.permute.xlu2 %91  }
  0x7e   :  { %22 = vst.msk [vmem:[#allocation0] sm:$0x1] %vm21_vm3, %v20_v20  }
  0x7f   :  { %28 = vst.msk [vmem:[#allocation0] sm:$0x1] %vm27_vm4, %v26_v23  }
  0x80   :  { %34 = vst.msk [vmem:[#allocation0] sm:$0x1] %vm33_vm5, %v32_v16  }
  0x81   :  { %40 = vst.msk [vmem:[#allocation0] sm:$0x1] %vm39_vm6, %v38_v17  }
  0x84   :  { %v44_v25 = vpop.permute.xlu0 %43   ;;  %v50_v26 = vpop.permute.xlu1 %49  }
  0x85   :  { %46 = vst.msk [vmem:[#allocation0] sm:$0x1] %vm45_vm7, %v44_v25  }
  0x86   :  { %52 = vst.msk [vmem:[#allocation0] sm:$0x1] %vm51_vm8, %v50_v26  }
  0x87   :  { %58 = vst.msk [vmem:[#allocation0] sm:$0x1] %vm57_vm9, %v56_v18  }
  0x8c   :  { %v62_v27 = vpop.permute.xlu0 %61   ;;  %v68_v28 = vpop.permute.xlu1 %67  }
  0x8d   :  { %64 = vst.msk [vmem:[#allocation0] sm:$0x1] %vm63_vm10, %v62_v27  }
  0x8e   :  { %70 = vst.msk [vmem:[#allocation0] sm:$0x1] %vm69_vm11, %v68_v28  }
  0x8f   :  { %76 = vst.msk [vmem:[#allocation0] sm:$0x1] %vm75_vm12, %v74_v21  }
  0x94   :  { %v80_v29 = vpop.permute.xlu0 %79   ;;  %v86_v30 = vpop.permute.xlu1 %85  }
  0x95   :  { %82 = vst.msk [vmem:[#allocation0] sm:$0x1] %vm81_vm13, %v80_v29  }
  0x96   :  { %88 = vst.msk [vmem:[#allocation0] sm:$0x1] %vm87_vm14, %v86_v30  }
  0x97   :  { %94 = vst.msk [vmem:[#allocation0] sm:$0x1] %vm93_vm15, %v92_v24  }
  0x9e   :  { %v97_v31 = vld [vmem:[#allocation0] sm:$0x1] }
  0x9f   :  { %100 = vst [vmem:[%s208_s1] sm:$0x1] %v97_v31 }

// kernel: basic_block_forward.5
= control target key start
LH: loop header
LB: loop body
LE: loop exit
PB: predicated region body
PF: predicated region fallthrough
CT: control target
= control target key end

     0   :  { %s446_s21 = smov 0   ;;  %s478_s0 = inlined_call_operand.vmem [shape: f32[2,16,128], index: 0, kind: input, shape index: {}]   ;;  %s479_s1 = inlined_call_operand.vmem [shape: f32[1,128], index: 1, kind: input, shape index: {}]   ;;  %s480_s2 = inlined_call_operand.vmem [shape: f32[1,128], index: 2, kind: input, shape index: {}]   ;;  %s481_s3 = inlined_call_operand.vmem [shape: f32[2,16,128], index: 3, kind: input, shape index: {}]   ;;  %s482_s4 = inlined_call_operand.vmem [shape: f32[1,128], index: 4, kind: input, shape index: {}]   ;;  %s483_s5 = inlined_call_operand.vmem [shape: f32[1,128], index: 5, kind: input, shape index: {}]   ;;  %s484_s6 = inlined_call_operand.vmem [shape: f32[2,16,128], index: 6, kind: output, shape index: {}]  }
   0x1 LB: > { %s375_s22 = sadd.s32 4294967295, %s409_s21   ;;  %p379_p0 = scmp.ge.s32.totalorder %s409_s21, 1  ;;  %s409_s21 = sphi %s446_s21, %s16_s21  }
   0x2   : > { %p222_p1 = scmp.lt.s32.totalorder %s409_s21, 3 }
   0x4   : > { %p223_p2 = pnand %p379_p0, %p222_p1 }
   0x5   : > { %p257_p3 = scmp.lt.s32.totalorder (!%p223_p2), %s375_s22, 1 }
   0x6   : > { %226 = sbr.rel (%p223_p2) target bundleno = 27 (0x1b), region = 44 }
   0xb   : > { %s486_s22 = smov (!%p257_p3, %s375_s22), 1  ;;  %v399_v0 = vld [vmem:[%s482_s4] ss:$0 sm:$0xff] }
   0xc   : > { %v401_v1 = vld [vmem:[%s479_s1] ss:$0 sm:$0xff]  ;;  %s388_s27 = sshll.u32 %s486_s22, 4 }
   0xd   : > { %s261_s30 = scalar_lea.vmem %s478_s0, %s388_s27  ;;  %s266_s9 = scalar_lea.vmem %s481_s3, %s388_s27  ;;  %v400_v2 = vld [vmem:[%s483_s5] ss:$0 sm:$0xff] }
   0xe   : > { %v402_v3 = vld [vmem:[%s480_s2] ss:$0 sm:$0xff]  ;;  %v273_v5 = vld [vmem:[%s266_s9 + $0x8] sm:$0xff]  ;;  %s271_s16 = scalar_lea.vmem %s484_s6, %s388_s27 }
   0xf   : > { %v272_v4 = vld [vmem:[%s266_s9] sm:$0xff]  ;;  %v289_v8 = vld [vmem:[%s261_s30 + $0x8] sm:$0xff]  ;;  %v279_v10 = vmul.f32 %v399_v0, %v273_v5 }
  0x10   : > { %v288_v6 = vld [vmem:[%s261_s30] sm:$0xff]  ;;  %v278_v7 = vmul.f32 %v399_v0, %v272_v4  ;;  %v295_v11 = vmul.f32 %v401_v1, %v289_v8 }
  0x11   : > { %v294_v9 = vmul.f32 %v401_v1, %v288_v6  ;;  %v285_v14 = vadd.f32 %v400_v2, %v279_v10 }
  0x12   : > { %v284_v12 = vadd.f32 %v400_v2, %v278_v7  ;;  %v301_v15 = vadd.f32 %v402_v3, %v295_v11 }
  0x13   : > { %v300_v13 = vadd.f32 %v402_v3, %v294_v9  ;;  %v287_v17 = vmax.f32 %v285_v14, 0.0 }
  0x14   : > { %v286_v16 = vmax.f32 %v284_v12, 0.0 }
  0x15   : > { %v303_v19 = vadd.f32 %v301_v15, %v287_v17 }
  0x16   : > { %v302_v18 = vadd.f32 %v300_v13, %v286_v16 }
  0x17   : > { %v305_v21 = vmax.f32 %v303_v19, 0.0 }
  0x18   : > { %v304_v20 = vmax.f32 %v302_v18, 0.0 }
  0x19   : > { %307 = vst [vmem:[%s271_s16 + $0x8] sm:$0xff] %v305_v21 }
  0x1a   : > { %306 = vst [vmem:[%s271_s16] sm:$0xff] %v304_v20 }
  0x1b PF: > { %s16_s21 = sadd.s32 1, %s409_s21  }
  0x1c   : > { %p13_p4 = scmp.ge.s32.totalorder %s16_s21, 4  }
  0x1e   :  { %15 = sbr.rel (!%p13_p4) target bundleno = 1 (0x1), region = 77 }

// kernel: basic_block_forward.4
= control target key start
LH: loop header
LB: loop body
LE: loop exit
PB: predicated region body
PF: predicated region fallthrough
CT: control target
= control target key end

     0   :  { %s874_s18 = smov 0   ;;  %s982_s0 = inlined_call_operand.vmem [shape: f32[2,16,128], index: 0, kind: input, shape index: {}]   ;;  %s983_s1 = inlined_call_operand.vmem [shape: f32[1,128], index: 1, kind: input, shape index: {}]   ;;  %s984_s2 = inlined_call_operand.vmem [shape: f32[1,128], index: 2, kind: input, shape index: {}]   ;;  %s985_s3 = inlined_call_operand.vmem [shape: bf16[3,128,128], index: 3, kind: input, shape index: {}]   ;;  %s986_s4 = inlined_call_operand.vmem [shape: f32[2,16,128], index: 4, kind: output, shape index: {0}]   ;;  %s987_s5 = inlined_call_operand.vmem [shape: f32[2,2,128], index: 5, kind: output, shape index: {1}]  }
   0x1 LB: > { %s654_s19 = sadd.s32 4294967295, %s841_s18   ;;  %p658_p0 = scmp.ge.s32.totalorder %s841_s18, 1  ;;  %s841_s18 = sphi %s874_s18, %s16_s18  }
   0x2   : > { %p190_p1 = scmp.lt.s32.totalorder %s841_s18, 3 }
   0x4   : > { %p191_p2 = pnand %p658_p0, %p190_p1 }
   0x5   : > { %p222_p3 = scmp.lt.s32.totalorder (!%p191_p2), %s654_s19, 1 }
   0x6   : > { %194 = sbr.rel (%p191_p2) target bundleno = 331 (0x14b), region = 36 }
   0xb   : > { %v254_v0 = vlaneseq  ;;  %s989_s19 = smov (!%p222_p3, %s654_s19), 1  ;;  %v815_v2 = vld [vmem:[%s985_s3 + $0x78] sm:$0xff]  ;;  %v833_v4 = vld [vmem:[%s983_s1] ss:$0 sm:$0xff]  ;;  %v814_v8 = vld [vmem:[%s985_s3 + $0x70] sm:$0xff]  ;;  %v843_v23 = vmov 0.0  }
   0xc   : > { %v807_v3 = vld [vmem:[%s985_s3 + $0x38] sm:$0xff]  ;;  %s798_s26 = sshll.u32 %s989_s19, 4  ;;  %391 = vmatpush.bf16.msra.mxu2 %v815_v2  ;;  %v806_v9 = vld [vmem:[%s985_s3 + $0x30] sm:$0xff]  ;;  %v834_v10 = vld [vmem:[%s984_s2] ss:$0 sm:$0xff]  ;;  %vm273_vm2 = vcmask 130048  }
   0xd   : > { %v255_v1 = vshrl.u32 %v254_v0, 7  ;;  %v258_v6 = vand.u32 127, %v254_v0  ;;  %453 = vmatpush.bf16.msra.mxu3 %v807_v3  ;;  %s226_s8 = scalar_lea.vmem %s982_s0, %s798_s26  ;;  %v823_v11 = vld [vmem:[%s985_s3 + $0xb8] sm:$0xff]  ;;  %v813_v17 = vld [vmem:[%s985_s3 + $0x68] sm:$0xff]  ;;  %v812_v26 = vld [vmem:[%s985_s3 + $0x60] sm:$0xff]  ;;  %s231_s9 = scalar_lea.vmem %s986_s4, %s798_s26 }
   0xe   : > { %v237_v12 = vld [vmem:[%s226_s8] sm:$0xff]  ;;  %v238_v13 = vld [vmem:[%s226_s8 + $0x8] sm:$0xff]  ;;  %532 = vmatpush.bf16.msra.mxu0 %v823_v11  ;;  %v811_v30 = vld [vmem:[%s985_s3 + $0x58] sm:$0xff]  ;;  %s663_s26 = sshll.u32 %s989_s19, 1 }
   0xf   : > { %v256_v5 = vadd.s32 8, %v255_v1  ;;  %v664_v7 = vadd.s32 4294967295, %v255_v1  ;;  %v243_v15 = vmul.f32 %v833_v4, %v237_v12  ;;  %v244_v16 = vmul.f32 %v833_v4, %v238_v13  ;;  %v805_v18 = vld [vmem:[%s985_s3 + $0x28] sm:$0xff]  ;;  %v804_v28 = vld [vmem:[%s985_s3 + $0x20] sm:$0xff]  ;;  %v803_v31 = vld [vmem:[%s985_s3 + $0x18] sm:$0xff]  ;;  %s235_s12 = scalar_lea.vmem %s987_s5, %s663_s26 }
  0x10   : > { %392 = vmatpush.bf16.msra.mxu2 %v814_v8  ;;  %v266_v32 = vadd.s32 1, %v255_v1  ;;  %v810_v37 = vld [vmem:[%s985_s3 + $0x50] sm:$0xff]  ;;  %v809_v40 = vld [vmem:[%s985_s3 + $0x48] sm:$0xff]  ;;  %v808_v43 = vld [vmem:[%s985_s3 + $0x40] sm:$0xff] }
  0x11   : > { %v665_v14 = vadd.s32 4294967295, %v256_v5  ;;  %vm261_vm0 = vcmp.eq.s32.totalorder %v258_v6, %v664_v7  ;;  %454 = vmatpush.bf16.msra.mxu3 %v806_v9  ;;  %v249_v19 = vadd.f32 %v834_v10, %v243_v15  ;;  %v250_v20 = vadd.f32 %v834_v10, %v244_v16  ;;  %v802_v38 = vld [vmem:[%s985_s3 + $0x10] sm:$0xff]  ;;  %v801_v41 = vld [vmem:[%s985_s3 + $0x8] sm:$0xff]  ;;  %v800_v44 = vld [vmem:[%s985_s3] sm:$0xff] }
  0x12   : > { %v263_v24 = vsel %vm261_vm0, 1.0, %v843_v23  ;;  %v267_v33 = vadd.s32 1, %v256_v5  ;;  %vm268_vm3 = vcmp.eq.s32.totalorder %v258_v6, %v266_v32  ;;  %v822_v39 = vld [vmem:[%s985_s3 + $0xb0] sm:$0xff]  ;;  %v821_v42 = vld [vmem:[%s985_s3 + $0xa8] sm:$0xff]  ;;  %v820_v45 = vld [vmem:[%s985_s3 + $0xa0] sm:$0xff] }
  0x13   : > { %vm262_vm1 = vcmp.eq.s32.totalorder %v258_v6, %v665_v14  ;;  %v251_v21 = vmax.f32 %v249_v19, 0.0  ;;  %v252_v22 = vmax.f32 %v250_v20, 0.0  ;;  %v270_v34 = vsel %vm268_vm3, 1.0, %v843_v23  ;;  %533 = vmatpush.bf16.msra.mxu0 %v822_v39  ;;  %v819_v46 = vld [vmem:[%s985_s3 + $0x98] sm:$0xff]  ;;  %v818_v47 = vld [vmem:[%s985_s3 + $0x90] sm:$0xff]  ;;  %v817_v48 = vld [vmem:[%s985_s3 + $0x88] sm:$0xff] }
  0x14   : > { %v264_v25 = vsel %vm262_vm1, 1.0, %v843_v23  ;;  %393 = vmatpush.bf16.msra.mxu2 %v813_v17  ;;  %vm269_vm4 = vcmp.eq.s32.totalorder %v258_v6, %v267_v33  ;;  %v816_v49 = vld [vmem:[%s985_s3 + $0x80] sm:$0xff] }
  0x15   : > { %455 = vmatpush.bf16.msra.mxu3 %v805_v18  ;;  %v253_v27 = vpack.c.bf16 %v252_v22, %v251_v21  ;;  %v265_v29 = vpack.c.bf16 %v264_v25, %v263_v24  ;;  %v271_v35 = vsel %vm269_vm4, 1.0, %v843_v23 }
  0x16   : > { %v272_v36 = vpack.c.bf16 %v271_v35, %v270_v34 }
  0x17   : > { %284 = vmatpush.bf16.msra.mxu1 %v253_v27  ;;  %534 = vmatpush.bf16.msra.mxu0 %v821_v42 }
  0x18   : > { %394 = vmatpush.bf16.msra.mxu2 %v812_v26 }
  0x19   : > { %456 = vmatpush.bf16.msra.mxu3 %v804_v28 }
  0x1a   : > { %666 = vmatmul.msk.bf16.vlgmr.msra.gmra.mxu1 %vm273_vm2, %v265_v29 }
  0x1b   : > { %302 = vmatpush.bf16.msrb.mxu1 %v253_v27  ;;  %535 = vmatpush.bf16.msra.mxu0 %v820_v45 }
  0x1c   : > { %395 = vmatpush.bf16.msra.mxu2 %v811_v30 }
  0x1d   : > { %457 = vmatpush.bf16.msra.mxu3 %v803_v31 }
  0x1f   : > { %536 = vmatpush.bf16.msra.mxu0 %v819_v46 }
  0x20   : > { %396 = vmatpush.bf16.msra.mxu2 %v810_v37 }
  0x21   : > { %458 = vmatpush.bf16.msra.mxu3 %v802_v38 }
  0x23   : > { %537 = vmatpush.bf16.msra.mxu0 %v818_v47 }
  0x24   : > { %397 = vmatpush.bf16.msra.mxu2 %v809_v40 }
  0x25   : > { %459 = vmatpush.bf16.msra.mxu3 %v801_v41 }
  0x27   : > { %538 = vmatpush.bf16.msra.mxu0 %v817_v48 }
  0x28   : > { %398 = vmatpush.bf16.msra.mxu2 %v808_v43 }
  0x29   : > { %460 = vmatpush.bf16.msra.mxu3 %v800_v44 }
  0x2a   : > { %667 = vmatmul.msk.bf16.vlgmr.msrb.gmra.mxu1 %vm273_vm2, %v272_v36 }
  0x2b   : > { %399 = vmatmul.bf16.vlgmr.msra.gmra.mxu2 %v253_v27  ;;  %539 = vmatpush.bf16.msra.mxu0 %v816_v49 }
  0x97   : > { %v286_v50 = vpop.f32.mrf.mxu1 }
  0x9f   : > { %v288_v51 = vpop.f32.mrf.mxu1 }
  0xa0   : > { %v291_v52 = vpack.c.bf16 %v288_v51, %v286_v50 }
  0xa2   : > { %461 = vmatmul.bf16.vlgmr.msra.gmra.mxu3 %v291_v52 }
  0xa7   : > { %v304_v53 = vpop.f32.mrf.mxu1 }
  0xae   : > { %v400_v56 = vpop.f32.mrf.mxu2 }
  0xaf   : > { %v306_v54 = vpop.f32.mrf.mxu1 }
  0xb0   : > { %v309_v55 = vpack.c.bf16 %v306_v54, %v304_v53 }
  0xb2   : > { %540 = vmatmul.bf16.vlgmr.msra.gmra.mxu0 %v309_v55 }
  0xb6   : > { %v402_v61 = vpop.f32.mrf.mxu2 }
 0x125   : > { %v462_v57 = vpop.f32.mrf.mxu3 }
 0x126   : > { %v463_v58 = vadd.f32 %v462_v57, %v400_v56 }
 0x12d   : > { %v464_v62 = vpop.f32.mrf.mxu3 }
 0x12e   : > { %v465_v63 = vadd.f32 %v464_v62, %v402_v61 }
 0x12f   : > { %v541_v59 = vpop.f32.mrf.mxu0 }
 0x130   : > { %v546_v60 = vadd.f32 %v541_v59, %v463_v58 }
 0x132   : > { %566 = vst [vmem:[%s231_s9] sm:$0xff] %v546_v60  ;;  %v556_v2 = vmul.f32 %v546_v60, %v546_v60 }
 0x137   : > { %v543_v0 = vpop.f32.mrf.mxu0 }
 0x138   : > { %v547_v1 = vadd.f32 %v543_v0, %v465_v63 }
 0x13a   : > { %v548_v3 = vadd.f32 %v547_v1, %v546_v60  ;;  %v557_v4 = vmul.f32 %v547_v1, %v547_v1  ;;  %567 = vst [vmem:[%s231_s9 + $0x8] sm:$0xff] %v547_v1 }
 0x13c   : > { %v549_v5 = vrot.slane %v548_v3, 4  ;;  %v558_v6 = vadd.f32 %v557_v4, %v556_v2 }
 0x13e   : > { %v550_v7 = vadd.f32 %v549_v5, %v548_v3  ;;  %v559_v8 = vrot.slane %v558_v6, 4 }
 0x140   : > { %v551_v9 = vrot.slane %v550_v7, 2  ;;  %v560_v10 = vadd.f32 %v559_v8, %v558_v6 }
 0x142   : > { %v552_v11 = vadd.f32 %v551_v9, %v550_v7  ;;  %v561_v12 = vrot.slane %v560_v10, 2 }
 0x144   : > { %v553_v13 = vrot.slane %v552_v11, 1  ;;  %v562_v14 = vadd.f32 %v561_v12, %v560_v10 }
 0x146   : > { %v554_v15 = vadd.f32 %v553_v13, %v552_v11  ;;  %v563_v16 = vrot.slane %v562_v14, 1 }
 0x148   : > { %555 = vst [vmem:[%s235_s12] sm:$0x1] %v554_v15  ;;  %v564_v17 = vadd.f32 %v563_v16, %v562_v14 }
 0x14a   : > { %565 = vst [vmem:[%s235_s12 + $0x1] sm:$0x1] %v564_v17 }
 0x14b PF: > { %s16_s18 = sadd.s32 1, %s841_s18  }
 0x14c   : > { %p13_p4 = scmp.ge.s32.totalorder %s16_s18, 4  }
 0x14e   :  { %15 = sbr.rel (!%p13_p4) target bundleno = 1 (0x1), region = 80 }

// kernel: basic_block_forward.3
= control target key start
LH: loop header
LB: loop body
LE: loop exit
PB: predicated region body
PF: predicated region fallthrough
CT: control target
= control target key end

     0   :  { %s908_s21 = smov 0   ;;  %s999_s0 = inlined_call_operand.vmem [shape: f32[2,16,64], index: 0, kind: input, shape index: {}]   ;;  %s1000_s1 = inlined_call_operand.vmem [shape: bf16[3,64,128], index: 1, kind: input, shape index: {}]   ;;  %s1001_s2 = inlined_call_operand.vmem [shape: bf16[64,128], index: 2, kind: input, shape index: {}]   ;;  %s1002_s3 = inlined_call_operand.vmem [shape: f32[2,16,128], index: 3, kind: output, shape index: {0}]   ;;  %s1003_s4 = inlined_call_operand.vmem [shape: f32[2,2,128], index: 4, kind: output, shape index: {1}]   ;;  %s1004_s5 = inlined_call_operand.vmem [shape: f32[2,16,128], index: 5, kind: output, shape index: {2}]   ;;  %s1005_s6 = inlined_call_operand.vmem [shape: f32[2,2,128], index: 6, kind: output, shape index: {3}]  }
   0x1 LB: > { %s733_s22 = sadd.s32 4294967295, %s870_s21   ;;  %p737_p0 = scmp.ge.s32.totalorder %s870_s21, 1  ;;  %s870_s21 = sphi %s908_s21, %s17_s21  }
   0x2   : > { %p219_p1 = scmp.lt.s32.totalorder %s870_s21, 3 }
   0x4   : > { %p220_p2 = pnand %p737_p0, %p219_p1 }
   0x5   : > { %p262_p3 = scmp.lt.s32.totalorder (!%p220_p2), %s733_s22, 1 }
   0x6   : > { %223 = sbr.rel (%p220_p2) target bundleno = 320 (0x140), region = 32 }
   0xb   : > { %v289_v0 = vlaneseq  ;;  %v846_v1 = vld [vmem:[%s1000_s1 + $0x38] sm:$0xff]  ;;  %s1007_s22 = smov (!%p262_p3, %s733_s22), 1  ;;  %v845_v5 = vld [vmem:[%s1000_s1 + $0x30] sm:$0xff]  ;;  %v844_v14 = vld [vmem:[%s1000_s1 + $0x28] sm:$0xff]  ;;  %v872_v16 = vmov 0.0   ;;  %vm308_vm4 = vcmask 130048  }
   0xc   : > { %v842_v2 = vld [vmem:[%s1000_s1 + $0x18] sm:$0xff]  ;;  %394 = vmatpush.bf16.msra.mxu2 %v846_v1  ;;  %s928_s29 = sshll.u32 %s1007_s22, 4  ;;  %v853_v24 = vld [vmem:[%s1001_s2 + $0x10] sm:$0xff]  ;;  %v843_v25 = vld [vmem:[%s1000_s1 + $0x20] sm:$0xff]  ;;  %vm386_vm5 = vcmask 523264   ;;  %s742_s17 = sshll.u32 %s1007_s22, 1 }
   0xd   : > { %v290_v3 = vshrl.u32 %v289_v0, 7  ;;  %v293_v4 = vand.u32 127, %v289_v0  ;;  %435 = vmatpush.bf16.msra.mxu3 %v842_v2  ;;  %s266_s8 = scalar_lea.vmem %s999_s0, %s928_s29  ;;  %v854_v9 = vld [vmem:[%s1001_s2 + $0x18] sm:$0xff]  ;;  %v841_v26 = vld [vmem:[%s1000_s1 + $0x10] sm:$0xff]  ;;  %v852_v28 = vld [vmem:[%s1001_s2 + $0x8] sm:$0xff]  ;;  %s280_s16 = scalar_lea.vmem %s1004_s5, %s928_s29 }
   0xe   : > { %v286_v10 = vld [vmem:[%s266_s8] sm:$0xff]  ;;  %v287_v11 = vld [vmem:[%s266_s8 + $0x8] sm:$0xff]  ;;  %v850_v19 = vld [vmem:[%s1000_s1 + $0x58] sm:$0xff]  ;;  %s284_s20 = scalar_lea.vmem %s1005_s6, %s742_s17  ;;  %s271_s25 = scalar_lea.vmem %s1002_s3, %s928_s29 }
   0xf   : > { %v291_v6 = vadd.s32 8, %v290_v3  ;;  %v746_v7 = vadd.s32 4294967295, %v290_v3  ;;  %v301_v8 = vadd.s32 1, %v290_v3  ;;  %v288_v15 = vpack.c.bf16 %v287_v11, %v286_v10  ;;  %v849_v27 = vld [vmem:[%s1000_s1 + $0x50] sm:$0xff]  ;;  %v840_v29 = vld [vmem:[%s1000_s1 + $0x8] sm:$0xff]  ;;  %v851_v31 = vld [vmem:[%s1001_s2] sm:$0xff]  ;;  %s275_s27 = scalar_lea.vmem %s1003_s4, %s742_s17 }
  0x10   : > { %395 = vmatpush.bf16.msra.mxu2 %v845_v5  ;;  %v848_v30 = vld [vmem:[%s1000_s1 + $0x48] sm:$0xff]  ;;  %v839_v32 = vld [vmem:[%s1000_s1] sm:$0xff] }
  0x11   : > { %v747_v12 = vadd.s32 4294967295, %v291_v6  ;;  %vm296_vm0 = vcmp.eq.s32.totalorder %v293_v4, %v746_v7  ;;  %v302_v13 = vadd.s32 1, %v291_v6  ;;  %vm303_vm1 = vcmp.eq.s32.totalorder %v293_v4, %v301_v8  ;;  %319 = vmatpush.bf16.msra.mxu0 %v288_v15  ;;  %337 = vmatpush.bf16.msra.mxu1 %v288_v15  ;;  %v847_v33 = vld [vmem:[%s1000_s1 + $0x40] sm:$0xff] }
  0x12   : > { %v298_v17 = vsel %vm296_vm0, 1.0, %v872_v16  ;;  %v305_v18 = vsel %vm303_vm1, 1.0, %v872_v16  ;;  %436 = vmatpush.bf16.msra.mxu3 %v841_v26 }
  0x13   : > { %vm297_vm2 = vcmp.eq.s32.totalorder %v293_v4, %v747_v12  ;;  %vm304_vm3 = vcmp.eq.s32.totalorder %v293_v4, %v302_v13 }
  0x14   : > { %v299_v20 = vsel %vm297_vm2, 1.0, %v872_v16  ;;  %v306_v21 = vsel %vm304_vm3, 1.0, %v872_v16  ;;  %396 = vmatpush.bf16.msra.mxu2 %v844_v14 }
  0x15   : > { %v300_v22 = vpack.c.bf16 %v299_v20, %v298_v17  ;;  %v307_v23 = vpack.c.bf16 %v306_v21, %v305_v18  ;;  %553 = vmatpush.bf16.msrb.mxu1 %v854_v9  ;;  %485 = vmatpush.bf16.msrb.mxu0 %v850_v19 }
  0x16   : > { %437 = vmatpush.bf16.msra.mxu3 %v840_v29 }
  0x17   : > { %748 = vmatmul.msk.bf16.vlgmr.msra.gmra.mxu0 %vm308_vm4, %v300_v22  ;;  %749 = vmatmul.msk.bf16.vlgmr.msra.gmra.mxu1 %vm308_vm4, %v307_v23 }
  0x18   : > { %397 = vmatpush.bf16.msra.mxu2 %v843_v25 }
  0x19   : > { %554 = vmatpush.bf16.msrb.mxu1 %v853_v24  ;;  %486 = vmatpush.bf16.msrb.mxu0 %v849_v27 }
  0x1a   : > { %438 = vmatpush.bf16.msra.mxu3 %v839_v32 }
  0x1b   : > { %774 = vmatmul.msk.bf16.vlgmr.msra.gmra.mxu2 %vm386_vm5, %v288_v15 }
  0x1d   : > { %555 = vmatpush.bf16.msrb.mxu1 %v852_v28  ;;  %487 = vmatpush.bf16.msrb.mxu0 %v848_v30 }
  0x21   : > { %556 = vmatpush.bf16.msrb.mxu1 %v851_v31  ;;  %488 = vmatpush.bf16.msrb.mxu0 %v847_v33 }
  0x27   : > { %833 = vmatmul.msk.bf16.vlgmr.msrb.gmra.mxu1 %vm386_vm5, %v288_v15 }
  0x94   : > { %v321_v34 = vpop.f32.mrf.mxu0  ;;  %v339_v35 = vpop.f32.mrf.mxu1 }
  0x9c   : > { %v323_v36 = vpop.f32.mrf.mxu0  ;;  %v341_v37 = vpop.f32.mrf.mxu1 }
  0x9d   : > { %v326_v38 = vpack.c.bf16 %v323_v36, %v321_v34  ;;  %v344_v39 = vpack.c.bf16 %v341_v37, %v339_v35 }
  0x9e   : > { %v399_v58 = vpop.f32.mrf.mxu2 }
  0x9f   : > { %791 = vmatmul.msk.bf16.vlgmr.msra.gmra.mxu3 %vm386_vm5, %v326_v38  ;;  %816 = vmatmul.msk.bf16.vlgmr.msrb.gmra.mxu0 %vm386_vm5, %v344_v39 }
  0xa4   : > { %v558_v40 = vpop.f32.mrf.mxu1 }
  0xa5   : > { %581 = vst [vmem:[%s280_s16] sm:$0xff] %v558_v40  ;;  %v571_v41 = vmul.f32 %v558_v40, %v558_v40 }
  0xa6   : > { %v401_v63 = vpop.f32.mrf.mxu2 }
  0xac   : > { %v560_v42 = vpop.f32.mrf.mxu1 }
  0xad   : > { %v563_v43 = vadd.f32 %v560_v42, %v558_v40  ;;  %v572_v44 = vmul.f32 %v560_v42, %v560_v42  ;;  %582 = vst [vmem:[%s280_s16 + $0x8] sm:$0xff] %v560_v42 }
  0xaf   : > { %v564_v45 = vrot.slane %v563_v43, 4  ;;  %v573_v46 = vadd.f32 %v572_v44, %v571_v41 }
  0xb1   : > { %v565_v47 = vadd.f32 %v564_v45, %v563_v43  ;;  %v574_v48 = vrot.slane %v573_v46, 4 }
  0xb3   : > { %v566_v49 = vrot.slane %v565_v47, 2  ;;  %v575_v50 = vadd.f32 %v574_v48, %v573_v46 }
  0xb5   : > { %v567_v51 = vadd.f32 %v566_v49, %v565_v47  ;;  %v576_v52 = vrot.slane %v575_v50, 2 }
  0xb7   : > { %v568_v53 = vrot.slane %v567_v51, 1  ;;  %v577_v54 = vadd.f32 %v576_v52, %v575_v50 }
  0xb9   : > { %v569_v55 = vadd.f32 %v568_v53, %v567_v51  ;;  %v578_v56 = vrot.slane %v577_v54, 1 }
  0xbb   : > { %570 = vst [vmem:[%s284_s20] sm:$0x1] %v569_v55  ;;  %v579_v57 = vadd.f32 %v578_v56, %v577_v54 }
  0xbd   : > { %580 = vst [vmem:[%s284_s20 + $0x1] sm:$0x1] %v579_v57 }
 0x11c   : > { %v490_v59 = vpop.f32.mrf.mxu0 }
 0x122   : > { %v440_v60 = vpop.f32.mrf.mxu3 }
 0x123   : > { %v441_v61 = vadd.f32 %v440_v60, %v399_v58 }
 0x124   : > { %v492_v2 = vpop.f32.mrf.mxu0 }
 0x125   : > { %v495_v62 = vadd.f32 %v490_v59, %v441_v61 }
 0x127   : > { %515 = vst [vmem:[%s271_s25] sm:$0xff] %v495_v62  ;;  %v505_v4 = vmul.f32 %v495_v62, %v495_v62 }
 0x12a   : > { %v442_v0 = vpop.f32.mrf.mxu3 }
 0x12b   : > { %v443_v1 = vadd.f32 %v442_v0, %v401_v63 }
 0x12d   : > { %v496_v3 = vadd.f32 %v492_v2, %v443_v1 }
 0x12f   : > { %v497_v5 = vadd.f32 %v496_v3, %v495_v62  ;;  %v506_v6 = vmul.f32 %v496_v3, %v496_v3  ;;  %516 = vst [vmem:[%s271_s25 + $0x8] sm:$0xff] %v496_v3 }
 0x131   : > { %v498_v7 = vrot.slane %v497_v5, 4  ;;  %v507_v8 = vadd.f32 %v506_v6, %v505_v4 }
 0x133   : > { %v499_v9 = vadd.f32 %v498_v7, %v497_v5  ;;  %v508_v10 = vrot.slane %v507_v8, 4 }
 0x135   : > { %v500_v11 = vrot.slane %v499_v9, 2  ;;  %v509_v12 = vadd.f32 %v508_v10, %v507_v8 }
 0x137   : > { %v501_v13 = vadd.f32 %v500_v11, %v499_v9  ;;  %v510_v14 = vrot.slane %v509_v12, 2 }
 0x139   : > { %v502_v15 = vrot.slane %v501_v13, 1  ;;  %v511_v16 = vadd.f32 %v510_v14, %v509_v12 }
 0x13b   : > { %v503_v17 = vadd.f32 %v502_v15, %v501_v13  ;;  %v512_v18 = vrot.slane %v511_v16, 1 }
 0x13d   : > { %504 = vst [vmem:[%s275_s27] sm:$0x1] %v503_v17  ;;  %v513_v19 = vadd.f32 %v512_v18, %v511_v16 }
 0x13f   : > { %514 = vst [vmem:[%s275_s27 + $0x1] sm:$0x1] %v513_v19 }
 0x140 PF: > { %s17_s21 = sadd.s32 1, %s870_s21  }
 0x141   : > { %p14_p4 = scmp.ge.s32.totalorder %s17_s21, 4  }
 0x143   :  { %16 = sbr.rel (!%p14_p4) target bundleno = 1 (0x1), region = 100 }

</bundles_post_ra>
